<compile_context>
chip_gen: v7x
topology: tpu7x:2x2x1
jax: 0.10.0
libtpu: 0.0.40
codegen_flags: <defaults>
</compile_context>

<pallas_src>
import functools

import jax
import jax.numpy as jnp
from jax.experimental import pallas as pl
from jax.experimental.pallas import tpu as pltpu


MASK_NEG = -1e30                 # finite "minus infinity" (no NaN on empty rows)
LOGIT_DTYPE = jnp.bfloat16       # attention-logit elementwise dtype: ~2x VPU
                                 # throughput on v6e/v7x; set jnp.float32 on v5e
                                 # (no bf16 VPU/EUP).  exp/sum/accum stay f32.
VMEM_LIMIT = 48 * 1024 * 1024    # explicit scoped-VMEM ceiling: above the 16/32 MiB
                                 # defaults, below v7x's 64 MiB physical.


def _round_up(x, m):
    return ((x + m - 1) // m) * m


# ------------------------------ Kernel 1: projection ------------------------------ #

def gat_project_kernel(x_ref, w_ref, ab_ref, z_ref, alpha_ref):
    # bf16 MXU operands, f32 accumulation.
    z32 = jnp.dot(x_ref[...], w_ref[...], preferred_element_type=jnp.float32)
    zb = z32.astype(jnp.bfloat16)
    z_ref[...] = zb
    # Fused src/dst attention logits [tn, 2H] in one MXU matmul (unpadded).
    alpha_ref[...] = jnp.dot(
        zb, ab_ref[...], preferred_element_type=jnp.float32).astype(alpha_ref.dtype)


def gat_project(x_bf, w_bf, ab_bf, *, tile_n):
    Np, Fin = x_bf.shape
    HC = w_bf.shape[1]
    A2 = ab_bf.shape[1]
    flops = 2 * Np * Fin * HC + 2 * Np * HC * A2
    bytes_accessed = 2 * (Np * Fin + Fin * HC + HC * A2 + Np * HC + Np * A2)
    return pl.pallas_call(
        gat_project_kernel,
        out_shape=(jax.ShapeDtypeStruct((Np, HC), jnp.bfloat16),
                   jax.ShapeDtypeStruct((Np, A2), LOGIT_DTYPE)),
        grid=(Np // tile_n,),
        in_specs=[
            pl.BlockSpec((tile_n, Fin), lambda i: (i, 0)),
            pl.BlockSpec((Fin, HC), lambda i: (0, 0)),
            pl.BlockSpec((HC, A2), lambda i: (0, 0)),
        ],
        out_specs=(pl.BlockSpec((tile_n, HC), lambda i: (i, 0)),
                   pl.BlockSpec((tile_n, A2), lambda i: (i, 0))),
        compiler_params=pltpu.CompilerParams(
            dimension_semantics=("parallel",),
            vmem_limit_bytes=VMEM_LIMIT),
        cost_estimate=pl.CostEstimate(flops=flops, transcendentals=0,
                                      bytes_accessed=bytes_accessed),
    )(x_bf, w_bf, ab_bf)


# ------------- Kernel 2: online-softmax masked attention + aggregation ------------- #

def gat_attn_kernel(adj_ref, z_ref, alpha_lt_ref, alpha_r_ref, bias_ref,
                    out_ref, m_sc, l_sc, acc_sc,
                    *, heads, out_ch, neg_slope, activation):
    k = pl.program_id(1)                                 # source-block index

    @pl.when(k == 0)
    def _():
        m_sc[...] = jnp.full(m_sc.shape, MASK_NEG, m_sc.dtype)
        l_sc[...] = jnp.zeros(l_sc.shape, l_sc.dtype)
        acc_sc[...] = jnp.zeros(acc_sc.shape, acc_sc.dtype)

    adj_pos = adj_ref[...] > 0                           # [tn, tk] bool, hoisted
    z = z_ref[...]                                       # [tk, HC] bf16 (src block)
    alpha_lt = alpha_lt_ref[...]                         # [H, tk]   (logit dtype)
    alpha_r = alpha_r_ref[...]                           # [tn, H]

    for h in range(heads):                               # static unroll (8 or 1);
        # per-head state lives in scratch slices, not Python-list temporaries.
        e = alpha_r[:, h:h + 1] + alpha_lt[h:h + 1, :]   # [tn, tk] bf16
        e = jnp.maximum(e, neg_slope * e)                # leaky relu (slope < 1)
        e = jnp.where(adj_pos, e, MASK_NEG)              # mask non-edges
        e = e.astype(jnp.float32)                        # exp / accumulation in f32
        m_prev = m_sc[h]                                 # [tn, 1]
        m_new = jnp.maximum(m_prev, jnp.max(e, axis=-1, keepdims=True))
        corr = jnp.exp(m_prev - m_new)
        p = jnp.exp(e - m_new)                           # [tn, tk] f32
        l_sc[h] = corr * l_sc[h] + jnp.sum(p, axis=-1, keepdims=True)
        acc_sc[h] = corr * acc_sc[h] + jnp.dot(
            p.astype(jnp.bfloat16), z[:, h * out_ch:(h + 1) * out_ch],
            preferred_element_type=jnp.float32)          # narrow-N MXU: accepted
        m_sc[h] = m_new

    @pl.when(k == pl.num_programs(1) - 1)
    def _():
        outs = [acc_sc[h] * pl.reciprocal(l_sc[h], approx=True)
                for h in range(heads)]
        out = outs[0] if heads == 1 else jnp.concatenate(outs, axis=-1)
        out = out + bias_ref[...]
        if activation == "elu":                          # fused inter-layer ELU
            out = jnp.where(out > 0.0, out, jnp.exp(out) - 1.0)
        out_ref[...] = out.astype(out_ref.dtype)


def gat_conv(x, w_bf, ab_bf, bias, adj_i8, *, heads, out_ch, neg_slope=0.2,
             tile_dst=128, tile_src=128, activation=None):
    """One MyGATConv layer (concat=True) on padded node arrays."""
    Np = x.shape[0]
    HC = heads * out_ch
    assert Np % tile_dst == 0 and Np % tile_src == 0
    assert tile_src % 128 == 0 or tile_src == Np
    assert tile_dst % 8 == 0

    z, alpha = gat_project(x.astype(jnp.bfloat16), w_bf, ab_bf, tile_n=tile_dst)
    alpha_lt = alpha[:, :heads].T            # [H, Np]  tiny layout glue (XLA)
    alpha_r = alpha[:, heads:2 * heads]      # [Np, H]

    kernel = functools.partial(gat_attn_kernel, heads=heads, out_ch=out_ch,
                               neg_slope=neg_slope, activation=activation)
    n_dst = Np // tile_dst
    flops = heads * Np * Np * (2 * out_ch + 8)
    transcendentals = heads * Np * Np
    bytes_accessed = (Np * Np                                  # int8 adjacency
                      + n_dst * (Np * HC * 2 + Np * heads * 4)  # z + alpha per dst tile
                      + Np * HC * 4)                            # f32 output
    return pl.pallas_call(
        kernel,
        out_shape=jax.ShapeDtypeStruct((Np, HC), jnp.float32),
        grid=(Np // tile_dst, Np // tile_src),
        in_specs=[
            pl.BlockSpec((tile_dst, tile_src), lambda i, k: (i, k)),   # adj (int8)
            pl.BlockSpec((tile_src, HC), lambda i, k: (k, 0)),         # z, src block
            pl.BlockSpec((heads, tile_src), lambda i, k: (0, k)),      # alpha_l^T
            pl.BlockSpec((tile_dst, heads), lambda i, k: (i, 0)),      # alpha_r, dst
            pl.BlockSpec((1, HC), lambda i, k: (0, 0)),                # bias
        ],
        out_specs=pl.BlockSpec((tile_dst, HC), lambda i, k: (i, 0)),
        scratch_shapes=[pltpu.VMEM((heads, tile_dst, 1), jnp.float32),      # m
                        pltpu.VMEM((heads, tile_dst, 1), jnp.float32),      # l
                        pltpu.VMEM((heads, tile_dst, out_ch), jnp.float32)],  # acc
        compiler_params=pltpu.CompilerParams(
            dimension_semantics=("parallel", "arbitrary"),
            vmem_limit_bytes=VMEM_LIMIT),
        cost_estimate=pl.CostEstimate(flops=flops,
                                      transcendentals=transcendentals,
                                      bytes_accessed=bytes_accessed),
    )(adj_i8, z, alpha_lt, alpha_r, bias)


# ---------------------------------- Parameters ------------------------------------ #

def glorot(key, shape):
    fan_in, fan_out = shape[-2], shape[-1]
    a = (6.0 / (fan_in + fan_out)) ** 0.5
    return jax.random.uniform(key, shape, jnp.float32, minval=-a, maxval=a)


def make_attn_matrix(attn_src, attn_dst):
    """attn_* [H, C] -> block-diag matrix [H*C, 2H] so that z @ M gives
    [alpha_l | alpha_r] (== (z.view(N,H,C)*attn).sum(-1)).  No lane padding."""
    H, C = attn_src.shape
    eye = jnp.eye(H, dtype=jnp.float32)
    a_src = (attn_src[:, :, None] * eye[:, None, :]).reshape(H * C, H)
    a_dst = (attn_dst[:, :, None] * eye[:, None, :]).reshape(H * C, H)
    return jnp.concatenate([a_src, a_dst], axis=1)        # [HC, 2H]


def init_gat_layer(key, in_ch, out_ch, heads):
    k1, k2, k3 = jax.random.split(key, 3)
    # torch Linear weight is [H*C, in]; we store the transposed [in, H*C].
    w = glorot(k1, (in_ch, heads * out_ch))
    attn_src = glorot(k2, (heads, out_ch))
    attn_dst = glorot(k3, (heads, out_ch))
    bias = jnp.zeros((1, heads * out_ch), jnp.float32)     # zeros() init
    return dict(w=w.astype(jnp.bfloat16),                  # bf16 MXU operands
                a_both=make_attn_matrix(attn_src, attn_dst).astype(jnp.bfloat16),
                bias=bias, heads=heads, out_ch=out_ch)


# ----------------------------------- Full model ------------------------------------ #

def mygat_forward(x, adj, layers, *, tile_dst=128, tile_src=128, pad_to=None):
    """adj[dst, src]: nonzero where an edge src->dst exists (self-loops included)."""
    # TODO(synk): F.dropout is a no-op here (eval-mode semantics; training=False).
    N = x.shape[0]
    Np = _round_up(max(N, tile_dst, tile_src), max(tile_dst, tile_src))
    if pad_to is not None:
        Np = max(Np, _round_up(pad_to, max(tile_dst, tile_src)))
    assert Np % tile_dst == 0 and Np % tile_src == 0

    # Zero-pad nodes up to Np.  Padded nodes get only a self-loop (keeps every
    # softmax row non-empty / finite) and are sliced off at the end; padded
    # source columns are masked out for real rows by adj == 0.
    xp = jnp.zeros((Np, x.shape[1]), jnp.float32).at[:N, :].set(x)
    adjp = jnp.zeros((Np, Np), jnp.int8).at[:N, :N].set(adj.astype(jnp.int8))
    adjp = adjp.at[jnp.arange(N, Np), jnp.arange(N, Np)].set(1)

    h = xp
    n_layers = len(layers)
    for li, p in enumerate(layers):
        act = "elu" if li < n_layers - 1 else None         # ELU fused in-kernel
        h = gat_conv(h, p["w"], p["a_both"], p["bias"], adjp,
                     heads=p["heads"], out_ch=p["out_ch"],
                     tile_dst=tile_dst, tile_src=tile_src, activation=act)
    # Final class softmax on the un-padded rows (tiny [N, classes]; left to XLA).
    return jax.nn.softmax(h[:N], axis=-1)


# -------------------------------------- Main --------------------------------------- #

if __name__ == "__main__":
    key = jax.random.PRNGKey(0)

    # Small synthetic graph / features.
    N = 16                 # nodes
    in_channels = 16       # input feature dim
    hidden_channels = 8
    heads = 8
    out_channels = 4       # number of classes
    num_layers = 2

    k_x, k_e, k_l1, k_l2 = jax.random.split(key, 4)

    x = jax.random.normal(k_x, (N, in_channels), jnp.float32)

    # Deterministic edge set: ring in both directions + a few extra edges.
    src = jnp.arange(N)
    dst = (src + 1) % N
    extra_src = jnp.array([0, 3, 5, 7, 9, 11], dtype=jnp.int32)
    extra_dst = jnp.array([8, 12, 1, 14, 2, 6], dtype=jnp.int32)
    edge_src = jnp.concatenate([src, dst, extra_src, extra_dst])
    edge_dst = jnp.concatenate([dst, src, extra_dst, extra_src])

    # Dense int8 adjacency mask adj[dst, src] with self loops (== add_self_loops).
    adj = jnp.zeros((N, N), jnp.int8)
    adj = adj.at[edge_dst, edge_src].set(1)
    adj = adj.at[jnp.arange(N), jnp.arange(N)].set(1)

    # Layer params: GATConv(16 -> 8, heads=8), GATConv(64 -> 4, heads=1).
    layer1 = init_gat_layer(k_l1, in_channels, hidden_channels, heads)
    layer2 = init_gat_layer(k_l2, hidden_channels * heads, out_channels, 1)

    # pad_to=256 with 128x128 tiles: 2 dst tiles (parallel axis -> both TCs on
    # v7x) and 2 src tiles (exercises the online-softmax accumulation path).
    out = mygat_forward(x, adj, [layer1, layer2],
                        tile_dst=128, tile_src=128, pad_to=256)
    out = jax.block_until_ready(out)

    assert out.shape == (N, out_channels)
    assert bool(jnp.all(jnp.isfinite(out)))
    # rows of the final softmax should sum to 1
    assert bool(jnp.allclose(jnp.sum(out, axis=-1), 1.0, atol=1e-5))

    print("KERNEL_OK")
</pallas_src>

<mosaic_0001>
module attributes {stable_mosaic.version = 11 : i64} {
  func.func @gat_project_kernel(%arg0: i32, %arg1: memref<128x16xbf16, #tpu.memory_space<vmem>>, %arg2: memref<16x64xbf16, #tpu.memory_space<vmem>>, %arg3: memref<64x16xbf16, #tpu.memory_space<vmem>>, %arg4: memref<128x64xbf16, #tpu.memory_space<vmem>>, %arg5: memref<128x16xbf16, #tpu.memory_space<vmem>>) attributes {dimension_semantics = [#tpu.dimension_semantics<parallel>], iteration_bounds = array<i64: 2>, scalar_prefetch = 0 : i64, scratch_operands = 0 : i64, tpu.core_type = #tpu.core_type<tc>, window_params = [{transform_indices = @transform_0, window_bounds = array<i64: 128, 16>}, {pipeline_mode = #tpu.pipeline_mode<synchronous>, transform_indices = @transform_1, window_bounds = array<i64: 16, 64>}, {pipeline_mode = #tpu.pipeline_mode<synchronous>, transform_indices = @transform_2, window_bounds = array<i64: 64, 16>}, {transform_indices = @transform_3, window_bounds = array<i64: 128, 64>}, {transform_indices = @transform_4, window_bounds = array<i64: 128, 16>}]} {
    %c0 = arith.constant 0 : index
    %c0_0 = arith.constant 0 : index
    %0 = vector.load %arg1[%c0, %c0_0] : memref<128x16xbf16, #tpu.memory_space<vmem>>, vector<128x16xbf16>
    %c0_1 = arith.constant 0 : index
    %c0_2 = arith.constant 0 : index
    %1 = vector.load %arg2[%c0_1, %c0_2] : memref<16x64xbf16, #tpu.memory_space<vmem>>, vector<16x64xbf16>
    %cst = arith.constant dense<0.000000e+00> : vector<128x64xf32>
    %2 = tpu.matmul %0, %1, %cst {dimension_numbers = #tpu.dot_dimension_numbers<[1], [0], [0], [1], [0, 0, 1, 1], [], []>} : vector<128x16xbf16>, vector<16x64xbf16>, vector<128x64xf32> -> vector<128x64xf32>
    %3 = arith.truncf %2 : vector<128x64xf32> to vector<128x64xbf16>
    %c0_3 = arith.constant 0 : index
    %c0_4 = arith.constant 0 : index
    %4 = vector.load %arg4[%c0_3, %c0_4] : memref<128x64xbf16, #tpu.memory_space<vmem>>, vector<128x64xbf16>
    tpu.vector_store %arg4[%c0_3, %c0_4], %3 {strides = array<i32>} : memref<128x64xbf16, #tpu.memory_space<vmem>>, vector<128x64xbf16>,
    %c0_5 = arith.constant 0 : index
    %c0_6 = arith.constant 0 : index
    %5 = vector.load %arg3[%c0_5, %c0_6] : memref<64x16xbf16, #tpu.memory_space<vmem>>, vector<64x16xbf16>
    %cst_7 = arith.constant dense<0.000000e+00> : vector<128x16xf32>
    %6 = tpu.matmul %3, %5, %cst_7 {dimension_numbers = #tpu.dot_dimension_numbers<[1], [0], [0], [1], [0, 0, 1, 1], [], []>} : vector<128x64xbf16>, vector<64x16xbf16>, vector<128x16xf32> -> vector<128x16xf32>
    %7 = arith.truncf %6 : vector<128x16xf32> to vector<128x16xbf16>
    %c0_8 = arith.constant 0 : index
    %c0_9 = arith.constant 0 : index
    %8 = vector.load %arg5[%c0_8, %c0_9] : memref<128x16xbf16, #tpu.memory_space<vmem>>, vector<128x16xbf16>
    tpu.vector_store %arg5[%c0_8, %c0_9], %7 {strides = array<i32>} : memref<128x16xbf16, #tpu.memory_space<vmem>>, vector<128x16xbf16>,
    return
  }
  func.func @transform_0(%arg0: i32) -> (i32, i32) {
    %c0_i32 = arith.constant 0 : i32
    %c0_i32_0 = arith.constant 0 : i32
    return %arg0, %c0_i32 : i32, i32
  }
  func.func @transform_1(%arg0: i32) -> (i32, i32) {
    %c0_i32 = arith.constant 0 : i32
    %c0_i32_0 = arith.constant 0 : i32
    %c0_i32_1 = arith.constant 0 : i32
    return %c0_i32, %c0_i32_0 : i32, i32
  }
  func.func @transform_2(%arg0: i32) -> (i32, i32) {
    %c0_i32 = arith.constant 0 : i32
    %c0_i32_0 = arith.constant 0 : i32
    %c0_i32_1 = arith.constant 0 : i32
    return %c0_i32, %c0_i32_0 : i32, i32
  }
  func.func @transform_3(%arg0: i32) -> (i32, i32) {
    %c0_i32 = arith.constant 0 : i32
    %c0_i32_0 = arith.constant 0 : i32
    return %arg0, %c0_i32 : i32, i32
  }
  func.func @transform_4(%arg0: i32) -> (i32, i32) {
    %c0_i32 = arith.constant 0 : i32
    %c0_i32_0 = arith.constant 0 : i32
    return %arg0, %c0_i32 : i32, i32
  }
}

</mosaic_0001>

<bundles_post_ra>
// kernel: tpu_custom_call.1
= control target key start
LH: loop header
LB: loop body
LE: loop exit
PB: predicated region body
PF: predicated region fallthrough
CT: control target
= control target key end

     0   :  { %s1031_s15 = smov 0   ;;  %s1155_s0 = inlined_call_operand.vmem [shape: bf16[256,16], index: 0, kind: input, shape index: {}]   ;;  %s1156_s1 = inlined_call_operand.vmem [shape: bf16[16,64], index: 1, kind: input, shape index: {}]   ;;  %s1157_s2 = inlined_call_operand.vmem [shape: bf16[64,16], index: 2, kind: input, shape index: {}]   ;;  %s1158_s3 = inlined_call_operand.vmem [shape: bf16[256,64], index: 3, kind: output, shape index: {0}]   ;;  %s1159_s4 = inlined_call_operand.vmem [shape: bf16[256,16], index: 4, kind: output, shape index: {1}]  }
   0x1 LB: > { %s808_s16 = sadd.s32 4294967295, %s1004_s15   ;;  %p812_p0 = scmp.ge.s32.totalorder %s1004_s15, 1  ;;  %s1004_s15 = sphi %s1031_s15, %s15_s15  }
   0x2   : > { %p166_p1 = scmp.lt.s32.totalorder %s1004_s15, 3 }
   0x4   : > { %p167_p2 = pnand %p812_p0, %p166_p1 }
   0x5   : > { %v985_v0 = vld [vmem:[%s1156_s1] sm:$0xff] (!%p167_p2)   ;;  %s813_s19 = sshll.u32 (!%p167_p2), %s808_s16, 4  ;;  %v995_v2 = vld [vmem:[%s1157_s2 + $0x8] sm:$0xff] (!%p167_p2)   ;;  %vm280_vm0 = vcmask (!%p167_p2), 130048   ;;  %v996_v3 = vld [vmem:[%s1157_s2 + $0x10] sm:$0xff] (!%p167_p2)   ;;  %vm466_vm1 = vcmask (!%p167_p2), 519168  }
   0x6   : > { %170 = sbr.rel (%p167_p2) target bundleno = 478 (0x1de), region = 32  ;;  %p198_p3 = scmp.lt.s32.totalorder (!%p167_p2), %s813_s19, 31  ;;  %935 = vmatprep.subr.bf16.mxu0 (!%p167_p2), %v985_v0  ;;  %v994_v1 = vld [vmem:[%s1157_s2] sm:$0xff] (!%p167_p2)   ;;  %v997_v12 = vld [vmem:[%s1157_s2 + $0x18] sm:$0xff] (!%p167_p2)   ;;  %vm515_vm2 = vcmask (!%p167_p2), 523264   ;;  %vm701_vm3 = vcmask (!%p167_p2), 125952  }
   0x7   : > { %936 = vmatpush3.bf16.msra.mxu0 (!%p167_p2), %v985_v0  ;;  %953 = vmatprep.subr.bf16.mxu1 (!%p167_p2), %v994_v1 }
   0x8   : > { %954 = vmatpush3.bf16.msra.mxu1 (!%p167_p2), %v994_v1 }
   0x9   : > { %955 = vmatprep.subr.bf16.mxu1 (!%p167_p2), %v995_v2 }
   0xc   : > { %956 = vmatpush3.bf16.msra.mxu1 (!%p167_p2), %v995_v2 }
   0xd   : > { %s1161_s19 = smov (!%p198_p3, %s813_s19), 31  ;;  %957 = vmatprep.subr.bf16.mxu1 %v996_v3 }
   0xe   : > { %s1048_s24 = sshll.u32 %s1161_s19, 2 }
   0xf   : > { %s201_s27 = scalar_lea.vmem %s1155_s0, %s1048_s24  ;;  %s1072_s8 = scalar_lea.vmem %s1158_s3, %s1048_s24 }
  0x10   : > { %v986_v4 = vld [vmem:[%s201_s27] sm:$0xff]   ;;  %v987_v5 = vld [vmem:[%s201_s27 + $0x8] sm:$0xff]   ;;  %v988_v6 = vld [vmem:[%s201_s27 + $0x10] sm:$0xff]   ;;  %958 = vmatpush3.bf16.msra.mxu1 %v996_v3  ;;  %s1118_s11 = scalar_lea.vmem %s1159_s4, %s1048_s24 }
  0x11   : > { %937 = vmatprep.mubr.msk.bf16.mxu0 %vm280_vm0, %v986_v4  ;;  %v989_v7 = vld [vmem:[%s201_s27 + $0x18] sm:$0xff]   ;;  %v990_v8 = vld [vmem:[%s201_s27 + $0x20] sm:$0xff]   ;;  %v991_v9 = vld [vmem:[%s201_s27 + $0x28] sm:$0xff]   ;;  %959 = vmatprep.subr.bf16.mxu1 %v997_v12 }
  0x12   : > { %938 = vmatmul.mubr.msk.bf16.vlgmr.msra.gmra.mrb[0].mxu0 %vm280_vm0, %v987_v5  ;;  %v992_v10 = vld [vmem:[%s201_s27 + $0x30] sm:$0xff]   ;;  %v993_v11 = vld [vmem:[%s201_s27 + $0x38] sm:$0xff]  }
  0x13   : > { %941 = vmatprep.mubr.msk.bf16.mxu0 %vm280_vm0, %v988_v6 }
  0x14   : > { %960 = vmatpush3.bf16.msra.mxu1 %v997_v12 }
  0x1a   : > { %942 = vmatmul.mubr.msk.bf16.gmra.mrb[4].mxu0 %vm280_vm0, %v989_v7 }
  0x1b   : > { %945 = vmatprep.mubr.msk.bf16.mxu0 %vm280_vm0, %v990_v8 }
  0x22   : > { %946 = vmatmul.mubr.msk.bf16.gmra.mrb[8].mxu0 %vm280_vm0, %v991_v9 }
  0x23   : > { %949 = vmatprep.mubr.msk.bf16.mxu0 %vm280_vm0, %v992_v10 }
  0x2a   : > { %950 = vmatmul.mubr.msk.bf16.gmra.mrb[12].mxu0 %vm280_vm0, %v993_v11 }
  0xe5   : > { %v939_v13 = vpop.f32.mrb[0].mxu0 }
  0xe6   : > { %v884_v14 = vpack.c.bf16 %v939_v13, %v939_v13  ;;  %v339_v15 = vpop.f32.mrb[1].mxu0 }
  0xe7   : > { %v882_v16 = vpack.c.bf16 %v339_v15, %v339_v15  ;;  %v940_v17 = vpop.f32.mrb[2].mxu0 }
  0xe8   : > { %469 = vst.msk [vmem:[%s1072_s8 + $0x8] sm:$0xf] %vm466_vm1, %v884_v14  ;;  %v403_v18 = vpack.c.bf16 %v940_v17, %v939_v13  ;;  %v885_v19 = vpack.c.bf16 %v940_v17, %v940_v17  ;;  %v342_v20 = vpop.f32.mrb[3].mxu0 }
  0xe9   : > { %467 = vst.msk [vmem:[%s1072_s8] sm:$0xf] %vm466_vm1, %v882_v16  ;;  %v883_v21 = vpack.c.bf16 %v342_v20, %v342_v20  ;;  %v402_v22 = vpack.c.bf16 %v342_v20, %v339_v15 }
  0xea   : > { %470 = vst.msk [vmem:[%s1072_s8 + $0xc] sm:$0xf] %vm466_vm1, %v885_v19 }
  0xeb   : > { %468 = vst.msk [vmem:[%s1072_s8 + $0x4] sm:$0xf] %vm466_vm1, %v883_v21  ;;  %961 = vmatprep.mubr.msk.bf16.mxu1 %vm515_vm2, %v402_v22 }
  0xec   : > { %962 = vmatmul.mubr.msk.bf16.vlgmr.msra.gmra.mrb[0].mxu1 %vm515_vm2, %v403_v18 }
  0xed   : > { %v943_v23 = vpop.f32.mrb[4].mxu0 }
  0xee   : > { %v888_v24 = vpack.c.bf16 %v943_v23, %v943_v23  ;;  %v355_v25 = vpop.f32.mrb[5].mxu0 }
  0xef   : > { %v886_v26 = vpack.c.bf16 %v355_v25, %v355_v25  ;;  %v944_v27 = vpop.f32.mrb[6].mxu0 }
  0xf0   : > { %473 = vst.msk [vmem:[%s1072_s8 + $0x18] sm:$0xf] %vm466_vm1, %v888_v24  ;;  %v405_v28 = vpack.c.bf16 %v944_v27, %v943_v23  ;;  %v889_v29 = vpack.c.bf16 %v944_v27, %v944_v27  ;;  %v358_v30 = vpop.f32.mrb[7].mxu0 }
  0xf1   : > { %471 = vst.msk [vmem:[%s1072_s8 + $0x10] sm:$0xf] %vm466_vm1, %v886_v26  ;;  %v404_v31 = vpack.c.bf16 %v358_v30, %v355_v25  ;;  %v887_v32 = vpack.c.bf16 %v358_v30, %v358_v30 }
  0xf2   : > { %474 = vst.msk [vmem:[%s1072_s8 + $0x1c] sm:$0xf] %vm466_vm1, %v889_v29 }
  0xf3   : > { %472 = vst.msk [vmem:[%s1072_s8 + $0x14] sm:$0xf] %vm466_vm1, %v887_v32  ;;  %965 = vmatprep.mubr.msk.bf16.mxu1 %vm515_vm2, %v404_v31 }
  0xf4   : > { %966 = vmatmul.mubr.msk.bf16.gmra.mrb[4].mxu1 %vm515_vm2, %v405_v28 }
  0xf5   : > { %v947_v33 = vpop.f32.mrb[8].mxu0 }
  0xf6   : > { %v892_v34 = vpack.c.bf16 %v947_v33, %v947_v33  ;;  %v371_v35 = vpop.f32.mrb[9].mxu0 }
  0xf7   : > { %v890_v36 = vpack.c.bf16 %v371_v35, %v371_v35  ;;  %v948_v37 = vpop.f32.mrb[10].mxu0 }
  0xf8   : > { %477 = vst.msk [vmem:[%s1072_s8 + $0x28] sm:$0xf] %vm466_vm1, %v892_v34  ;;  %v407_v38 = vpack.c.bf16 %v948_v37, %v947_v33  ;;  %v893_v39 = vpack.c.bf16 %v948_v37, %v948_v37  ;;  %v374_v40 = vpop.f32.mrb[11].mxu0 }
  0xf9   : > { %475 = vst.msk [vmem:[%s1072_s8 + $0x20] sm:$0xf] %vm466_vm1, %v890_v36  ;;  %v406_v41 = vpack.c.bf16 %v374_v40, %v371_v35  ;;  %v891_v42 = vpack.c.bf16 %v374_v40, %v374_v40 }
  0xfa   : > { %478 = vst.msk [vmem:[%s1072_s8 + $0x2c] sm:$0xf] %vm466_vm1, %v893_v39 }
  0xfb   : > { %476 = vst.msk [vmem:[%s1072_s8 + $0x24] sm:$0xf] %vm466_vm1, %v891_v42  ;;  %969 = vmatprep.mubr.msk.bf16.mxu1 %vm515_vm2, %v406_v41 }
  0xfc   : > { %970 = vmatmul.mubr.msk.bf16.gmra.mrb[8].mxu1 %vm515_vm2, %v407_v38 }
  0xfd   : > { %v951_v43 = vpop.f32.mrb[12].mxu0 }
  0xfe   : > { %v896_v44 = vpack.c.bf16 %v951_v43, %v951_v43  ;;  %v387_v45 = vpop.f32.mrb[13].mxu0 }
  0xff   : > { %v894_v46 = vpack.c.bf16 %v387_v45, %v387_v45  ;;  %v952_v47 = vpop.f32.mrb[14].mxu0 }
 0x100   : > { %481 = vst.msk [vmem:[%s1072_s8 + $0x38] sm:$0xf] %vm466_vm1, %v896_v44  ;;  %v409_v48 = vpack.c.bf16 %v952_v47, %v951_v43  ;;  %v897_v49 = vpack.c.bf16 %v952_v47, %v952_v47  ;;  %v390_v50 = vpop.f32.mrb[15].mxu0 }
 0x101   : > { %479 = vst.msk [vmem:[%s1072_s8 + $0x30] sm:$0xf] %vm466_vm1, %v894_v46  ;;  %v408_v51 = vpack.c.bf16 %v390_v50, %v387_v45  ;;  %v895_v52 = vpack.c.bf16 %v390_v50, %v390_v50 }
 0x102   : > { %482 = vst.msk [vmem:[%s1072_s8 + $0x3c] sm:$0xf] %vm466_vm1, %v897_v49 }
 0x103   : > { %480 = vst.msk [vmem:[%s1072_s8 + $0x34] sm:$0xf] %vm466_vm1, %v895_v52  ;;  %973 = vmatprep.mubr.msk.bf16.mxu1 %vm515_vm2, %v408_v51 }
 0x104   : > { %974 = vmatmul.mubr.msk.bf16.gmra.mrb[12].mxu1 %vm515_vm2, %v409_v48 }
 0x1bf   : > { %v963_v53 = vpop.f32.mrb[0].mxu1 }
 0x1c0   : > { %v900_v54 = vpack.c.bf16 %v963_v53, %v963_v53  ;;  %v574_v55 = vpop.f32.mrb[1].mxu1 }
 0x1c1   : > { %v898_v56 = vpack.c.bf16 %v574_v55, %v574_v55  ;;  %v964_v57 = vpop.f32.mrb[2].mxu1 }
 0x1c2   : > { %704 = vst.msk [vmem:[%s1118_s11 + $0x8] sm:$0xf] %vm701_vm3, %v900_v54  ;;  %v901_v58 = vpack.c.bf16 %v964_v57, %v964_v57  ;;  %v577_v59 = vpop.f32.mrb[3].mxu1 }
 0x1c3   : > { %702 = vst.msk [vmem:[%s1118_s11] sm:$0xf] %vm701_vm3, %v898_v56  ;;  %v899_v60 = vpack.c.bf16 %v577_v59, %v577_v59 }
 0x1c4   : > { %705 = vst.msk [vmem:[%s1118_s11 + $0xc] sm:$0xf] %vm701_vm3, %v901_v58 }
 0x1c5   : > { %703 = vst.msk [vmem:[%s1118_s11 + $0x4] sm:$0xf] %vm701_vm3, %v899_v60 }
 0x1c7   : > { %v967_v61 = vpop.f32.mrb[4].mxu1 }
 0x1c8   : > { %v904_v62 = vpack.c.bf16 %v967_v61, %v967_v61  ;;  %v590_v63 = vpop.f32.mrb[5].mxu1 }
 0x1c9   : > { %v902_v0 = vpack.c.bf16 %v590_v63, %v590_v63  ;;  %v968_v1 = vpop.f32.mrb[6].mxu1 }
 0x1ca   : > { %708 = vst.msk [vmem:[%s1118_s11 + $0x18] sm:$0xf] %vm701_vm3, %v904_v62  ;;  %v905_v2 = vpack.c.bf16 %v968_v1, %v968_v1  ;;  %v593_v3 = vpop.f32.mrb[7].mxu1 }
 0x1cb   : > { %706 = vst.msk [vmem:[%s1118_s11 + $0x10] sm:$0xf] %vm701_vm3, %v902_v0  ;;  %v903_v4 = vpack.c.bf16 %v593_v3, %v593_v3 }
 0x1cc   : > { %709 = vst.msk [vmem:[%s1118_s11 + $0x1c] sm:$0xf] %vm701_vm3, %v905_v2 }
 0x1cd   : > { %707 = vst.msk [vmem:[%s1118_s11 + $0x14] sm:$0xf] %vm701_vm3, %v903_v4 }
 0x1cf   : > { %v971_v5 = vpop.f32.mrb[8].mxu1 }
 0x1d0   : > { %v908_v6 = vpack.c.bf16 %v971_v5, %v971_v5  ;;  %v606_v7 = vpop.f32.mrb[9].mxu1 }
 0x1d1   : > { %v906_v8 = vpack.c.bf16 %v606_v7, %v606_v7  ;;  %v972_v9 = vpop.f32.mrb[10].mxu1 }
 0x1d2   : > { %712 = vst.msk [vmem:[%s1118_s11 + $0x28] sm:$0xf] %vm701_vm3, %v908_v6  ;;  %v909_v10 = vpack.c.bf16 %v972_v9, %v972_v9  ;;  %v609_v11 = vpop.f32.mrb[11].mxu1 }
 0x1d3   : > { %710 = vst.msk [vmem:[%s1118_s11 + $0x20] sm:$0xf] %vm701_vm3, %v906_v8  ;;  %v907_v12 = vpack.c.bf16 %v609_v11, %v609_v11 }
 0x1d4   : > { %713 = vst.msk [vmem:[%s1118_s11 + $0x2c] sm:$0xf] %vm701_vm3, %v909_v10 }
 0x1d5   : > { %711 = vst.msk [vmem:[%s1118_s11 + $0x24] sm:$0xf] %vm701_vm3, %v907_v12 }
 0x1d7   : > { %v975_v13 = vpop.f32.mrb[12].mxu1 }
 0x1d8   : > { %v912_v14 = vpack.c.bf16 %v975_v13, %v975_v13  ;;  %v622_v15 = vpop.f32.mrb[13].mxu1 }
 0x1d9   : > { %v910_v16 = vpack.c.bf16 %v622_v15, %v622_v15  ;;  %v976_v17 = vpop.f32.mrb[14].mxu1 }
 0x1da   : > { %716 = vst.msk [vmem:[%s1118_s11 + $0x38] sm:$0xf] %vm701_vm3, %v912_v14  ;;  %v913_v18 = vpack.c.bf16 %v976_v17, %v976_v17  ;;  %v625_v19 = vpop.f32.mrb[15].mxu1 }
 0x1db   : > { %714 = vst.msk [vmem:[%s1118_s11 + $0x30] sm:$0xf] %vm701_vm3, %v910_v16  ;;  %v911_v20 = vpack.c.bf16 %v625_v19, %v625_v19 }
 0x1dc   : > { %717 = vst.msk [vmem:[%s1118_s11 + $0x3c] sm:$0xf] %vm701_vm3, %v913_v18 }
 0x1dd   : > { %715 = vst.msk [vmem:[%s1118_s11 + $0x34] sm:$0xf] %vm701_vm3, %v911_v20 }
 0x1de PF: > { %s15_s15 = sadd.s32 1, %s1004_s15  }
 0x1df   : > { %p12_p4 = scmp.ge.s32.totalorder %s15_s15, 4  }
 0x1e1   :  { %14 = sbr.rel (!%p12_p4) target bundleno = 1 (0x1), region = 74 }

</bundles_post_ra>
